<compile_context>
chip_gen: v5e
topology: v5e:2x2
jax: 0.10.0
libtpu: 0.0.40
codegen_flags: <defaults>
</compile_context>

<pallas_src>
import functools

import jax
import jax.numpy as jnp
from jax import lax
from jax.experimental import pallas as pl
from jax.experimental.pallas import tpu as pltpu

EPS = 0.003
HID1 = 256
HID2 = 128
OUT_LANES = 128      # lane-dense output width (>= n_action, multiple of 128)
SUB_ROWS = 256       # in-kernel sub-chunk rows once the batch tile exceeds it


def _round_up(x, m):
    return ((x + m - 1) // m) * m


@functools.lru_cache(maxsize=1)
def _num_tensorcores():
    """Best-effort TensorCores-per-chip (v7x has 2, v5e/v6e have 1)."""
    try:
        info = pltpu.get_tpu_info()
        for name in ("num_cores", "core_count", "num_tensorcores",
                     "tensorcores_per_chip", "cores_per_chip"):
            v = getattr(info, name, None)
            if isinstance(v, int) and v > 0:
                return v
    except Exception:
        pass
    try:
        if "v7" in jax.devices()[0].device_kind.lower():
            return 2
    except Exception:
        pass
    return 1


def dqn_kernel(x_ref, w1_ref, b1_ref, w2_ref, b2_ref, w3_ref, b3_ref, o_ref, *,
               sub):
    cd = w1_ref.dtype                               # MXU input dtype (bf16)
    w1, w2, w3 = w1_ref[...], w2_ref[...], w3_ref[...]
    b1, b2, b3 = b1_ref[...], b2_ref[...], b3_ref[...]   # f32, shape (1, H)

    n_sub = x_ref.shape[0] // sub                   # static

    def process(c):
        row = c * sub
        if not isinstance(row, int):
            row = pl.multiple_of(row, sub)
        # fcs1 + ReLU: cast activations to bf16 only at the MXU input,
        # accumulate in f32, bias add / ReLU in f32 on the VPU.
        x = x_ref[pl.ds(row, sub), :].astype(cd)
        s1 = jnp.dot(x, w1, preferred_element_type=jnp.float32)
        s1 = jnp.maximum(s1 + b1, 0.0)
        # fcs2 + ReLU
        s2 = jnp.dot(s1.astype(cd), w2, preferred_element_type=jnp.float32)
        s2 = jnp.maximum(s2 + b2, 0.0)
        # fc3 (no activation) -> lane-dense (sub, 128) unmasked store
        out = jnp.dot(s2.astype(cd), w3, preferred_element_type=jnp.float32)
        o_ref[pl.ds(row, sub), :] = (out + b3).astype(o_ref.dtype)

    if n_sub == 1:
        process(0)
    else:
        def body(c, carry):
            process(c)
            return carry
        lax.fori_loop(0, n_sub, body, 0, unroll=True)


@functools.partial(jax.jit, static_argnames=("n_action",))
def dqn_forward(state, w1, b1, w2, b2, w3p, b3p, *, n_action):
    """state: [n, state_dim] f32. Params must come from prepare_dqn_params."""
    n, state_dim = state.shape
    out_pad = w3p.shape[1]

    # ---- generation-aware batch tiling (all static at trace time) -----------
    n_pad = _round_up(n, 8)
    cores = _num_tensorcores()
    if cores >= 2 and n_pad >= 16:
        bb = _round_up(-(-n_pad // cores), 8)       # even split across TCs (v7x)
    else:
        bb = n_pad                                  # one big tile on 1-TC chips
    bb = min(bb, 1024)
    if bb > SUB_ROWS:
        bb = _round_up(bb, SUB_ROWS)                # clean 256-row sub-chunks
        sub = SUB_ROWS
    else:
        sub = bb
    grid = (pl.cdiv(n, bb),)

    # ---- advisory cost hint so XLA overlaps surrounding work ----------------
    mm = state_dim * HID1 + HID1 * HID2 + HID2 * out_pad
    cost = pl.CostEstimate(
        flops=2 * n * mm,
        transcendentals=0,
        bytes_accessed=(n * state_dim * 4 + n * out_pad * 4
                        + mm * 2 + (HID1 + HID2 + out_pad) * 4),
    )

    # Weights / biases are tiny -> full, grid-invariant blocks (no re-DMA).
    full = lambda shape: pl.BlockSpec(shape, lambda i: (0, 0))

    out = pl.pallas_call(
        functools.partial(dqn_kernel, sub=sub),
        out_shape=jax.ShapeDtypeStruct((n, out_pad), jnp.float32),
        grid_spec=pl.GridSpec(
            grid=grid,
            in_specs=[
                pl.BlockSpec((bb, state_dim), lambda i: (i, 0)),   # f32 state
                full((state_dim, HID1)),
                full((1, HID1)),
                full((HID1, HID2)),
                full((1, HID2)),
                full((HID2, out_pad)),
                full((1, out_pad)),
            ],
            out_specs=pl.BlockSpec((bb, out_pad), lambda i: (i, 0)),
        ),
        compiler_params=pltpu.CompilerParams(
            dimension_semantics=("parallel",),
        ),
        cost_estimate=cost,
    )(state, w1, b1, w2, b2, w3p, b3p)

    return out[:, :n_action]


def prepare_dqn_params(w1, b1, w2, b2, w3, b3, compute_dtype=jnp.bfloat16):
    """One-time param prep (call OUTSIDE the per-step forward): cast weights to
    the MXU compute dtype, keep biases f32, zero-pad fc3 to 128 output lanes."""
    cd = jnp.dtype(compute_dtype)
    n_action = w3.shape[1]
    out_pad = _round_up(max(n_action, 1), OUT_LANES)
    w3p = jnp.zeros((w3.shape[0], out_pad), jnp.float32).at[:, :n_action].set(w3)
    b3p = jnp.zeros((1, out_pad), jnp.float32).at[:, :n_action].set(
        b3.reshape(1, -1).astype(jnp.float32))
    return (w1.astype(cd), b1.reshape(1, -1).astype(jnp.float32),
            w2.astype(cd), b2.reshape(1, -1).astype(jnp.float32),
            w3p.astype(cd), b3p)


def init_dqn_params(key, state_dim, n_action):
    """Deterministic init mimicking PyTorch nn.Linear defaults.

    PyTorch: W, b ~ U(-1/sqrt(fan_in), 1/sqrt(fan_in)); fc3 weight overridden
    to U(-EPS, EPS). Weights here are stored as [in, out] (transposed vs torch).
    """
    k1, k2, k3, k4, k5, k6 = jax.random.split(key, 6)

    def uniform(k, shape, bound):
        return jax.random.uniform(k, shape, jnp.float32, -bound, bound)

    b1_bound = 1.0 / jnp.sqrt(float(state_dim))
    b2_bound = 1.0 / jnp.sqrt(float(HID1))
    b3_bound = 1.0 / jnp.sqrt(float(HID2))

    w1 = uniform(k1, (state_dim, HID1), b1_bound)
    b1 = uniform(k2, (1, HID1), b1_bound)
    w2 = uniform(k3, (HID1, HID2), b2_bound)
    b2 = uniform(k4, (1, HID2), b2_bound)
    w3 = uniform(k5, (HID2, n_action), EPS)      # fc3.weight.data.uniform_(-EPS, EPS)
    b3 = uniform(k6, (1, n_action), b3_bound)    # fc3 bias keeps default init
    return w1, b1, w2, b2, w3, b3


def dqn_reference(state, w1, b1, w2, b2, w3, b3, compute_dtype=jnp.float32):
    """Pure-JAX reference using the same narrow-input / f32-accumulate recipe."""
    cd = jnp.dtype(compute_dtype)
    s1 = jax.nn.relu(
        jnp.dot(state.astype(cd), w1.astype(cd),
                preferred_element_type=jnp.float32) + b1)
    s2 = jax.nn.relu(
        jnp.dot(s1.astype(cd), w2.astype(cd),
                preferred_element_type=jnp.float32) + b2)
    return jnp.dot(s2.astype(cd), w3.astype(cd),
                   preferred_element_type=jnp.float32) + b3


if __name__ == "__main__":
    key = jax.random.PRNGKey(0)
    batch = 8
    state_dim = 16
    n_action = 4

    k_params, k_state = jax.random.split(key)
    raw_params = init_dqn_params(k_params, state_dim, n_action)
    params = prepare_dqn_params(*raw_params)           # bf16 weights, padded fc3
    state = jax.random.normal(k_state, (batch, state_dim), jnp.float32)

    out = dqn_forward(state, *params, n_action=n_action)
    out = jax.block_until_ready(out)

    # NOTE: MXU inputs are bf16, so compare against a bf16-recipe reference
    # (bit-parity with an f32 PyTorch model is not expected; fine for RL).
    ref = dqn_reference(state, *raw_params, compute_dtype=jnp.bfloat16)
    assert out.shape == (batch, n_action)
    assert jnp.all(jnp.isfinite(out)), "non-finite outputs"
    assert jnp.allclose(out, ref, atol=2e-3, rtol=2e-3), "mismatch vs reference"

    print("KERNEL_OK")
</pallas_src>

<mosaic_0001>
module attributes {stable_mosaic.version = 11 : i64} {
  func.func @dqn_kernel(%arg0: i32, %arg1: memref<8x16xf32, #tpu.memory_space<vmem>>, %arg2: memref<16x256xbf16, #tpu.memory_space<vmem>>, %arg3: memref<1x256xf32, #tpu.memory_space<vmem>>, %arg4: memref<256x128xbf16, #tpu.memory_space<vmem>>, %arg5: memref<1x128xf32, #tpu.memory_space<vmem>>, %arg6: memref<128x128xbf16, #tpu.memory_space<vmem>>, %arg7: memref<1x128xf32, #tpu.memory_space<vmem>>, %arg8: memref<8x128xf32, #tpu.memory_space<vmem>>) attributes {dimension_semantics = [#tpu.dimension_semantics<parallel>], iteration_bounds = array<i64: 1>, scalar_prefetch = 0 : i64, scratch_operands = 0 : i64, tpu.core_type = #tpu.core_type<tc>, window_params = [{transform_indices = @transform_0, window_bounds = array<i64: 8, 16>}, {pipeline_mode = #tpu.pipeline_mode<synchronous>, transform_indices = @transform_1, window_bounds = array<i64: 16, 256>}, {pipeline_mode = #tpu.pipeline_mode<synchronous>, transform_indices = @transform_2, window_bounds = array<i64: 1, 256>}, {pipeline_mode = #tpu.pipeline_mode<synchronous>, transform_indices = @transform_3, window_bounds = array<i64: 256, 128>}, {pipeline_mode = #tpu.pipeline_mode<synchronous>, transform_indices = @transform_4, window_bounds = array<i64: 1, 128>}, {pipeline_mode = #tpu.pipeline_mode<synchronous>, transform_indices = @transform_5, window_bounds = array<i64: 128, 128>}, {pipeline_mode = #tpu.pipeline_mode<synchronous>, transform_indices = @transform_6, window_bounds = array<i64: 1, 128>}, {transform_indices = @transform_7, window_bounds = array<i64: 8, 128>}]} {
    %c0 = arith.constant 0 : index
    %c0_0 = arith.constant 0 : index
    %0 = vector.load %arg2[%c0, %c0_0] : memref<16x256xbf16, #tpu.memory_space<vmem>>, vector<16x256xbf16>
    %c0_1 = arith.constant 0 : index
    %c0_2 = arith.constant 0 : index
    %1 = vector.load %arg4[%c0_1, %c0_2] : memref<256x128xbf16, #tpu.memory_space<vmem>>, vector<256x128xbf16>
    %c0_3 = arith.constant 0 : index
    %c0_4 = arith.constant 0 : index
    %2 = vector.load %arg6[%c0_3, %c0_4] : memref<128x128xbf16, #tpu.memory_space<vmem>>, vector<128x128xbf16>
    %c0_5 = arith.constant 0 : index
    %c0_6 = arith.constant 0 : index
    %3 = vector.load %arg3[%c0_5, %c0_6] : memref<1x256xf32, #tpu.memory_space<vmem>>, vector<1x256xf32>
    %c0_7 = arith.constant 0 : index
    %c0_8 = arith.constant 0 : index
    %4 = vector.load %arg5[%c0_7, %c0_8] : memref<1x128xf32, #tpu.memory_space<vmem>>, vector<1x128xf32>
    %c0_9 = arith.constant 0 : index
    %c0_10 = arith.constant 0 : index
    %5 = vector.load %arg7[%c0_9, %c0_10] : memref<1x128xf32, #tpu.memory_space<vmem>>, vector<1x128xf32>
    %c0_11 = arith.constant 0 : index
    %c0_12 = arith.constant 0 : index
    %6 = vector.load %arg1[%c0_11, %c0_12] : memref<8x16xf32, #tpu.memory_space<vmem>>, vector<8x16xf32>
    %7 = arith.truncf %6 : vector<8x16xf32> to vector<8x16xbf16>
    %cst = arith.constant dense<0.000000e+00> : vector<8x256xf32>
    %8 = tpu.matmul %7, %0, %cst {dimension_numbers = #tpu.dot_dimension_numbers<[1], [0], [0], [1], [0, 0, 1, 1], [], []>} : vector<8x16xbf16>, vector<16x256xbf16>, vector<8x256xf32> -> vector<8x256xf32>
    %9 = vector.broadcast %3 : vector<1x256xf32> to vector<8x256xf32>
    %10 = arith.addf %8, %9 : vector<8x256xf32>
    %cst_13 = arith.constant 0.000000e+00 : f32
    %11 = vector.broadcast %cst_13 : f32 to vector<8x256xf32>
    %12 = arith.maximumf %10, %11 : vector<8x256xf32>
    %13 = arith.truncf %12 : vector<8x256xf32> to vector<8x256xbf16>
    %cst_14 = arith.constant dense<0.000000e+00> : vector<8x128xf32>
    %14 = tpu.matmul %13, %1, %cst_14 {dimension_numbers = #tpu.dot_dimension_numbers<[1], [0], [0], [1], [0, 0, 1, 1], [], []>} : vector<8x256xbf16>, vector<256x128xbf16>, vector<8x128xf32> -> vector<8x128xf32>
    %15 = vector.broadcast %4 : vector<1x128xf32> to vector<8x128xf32>
    %16 = arith.addf %14, %15 : vector<8x128xf32>
    %cst_15 = arith.constant 0.000000e+00 : f32
    %17 = vector.broadcast %cst_15 : f32 to vector<8x128xf32>
    %18 = arith.maximumf %16, %17 : vector<8x128xf32>
    %19 = arith.truncf %18 : vector<8x128xf32> to vector<8x128xbf16>
    %cst_16 = arith.constant dense<0.000000e+00> : vector<8x128xf32>
    %20 = tpu.matmul %19, %2, %cst_16 {dimension_numbers = #tpu.dot_dimension_numbers<[1], [0], [0], [1], [0, 0, 1, 1], [], []>} : vector<8x128xbf16>, vector<128x128xbf16>, vector<8x128xf32> -> vector<8x128xf32>
    %21 = vector.broadcast %5 : vector<1x128xf32> to vector<8x128xf32>
    %22 = arith.addf %20, %21 : vector<8x128xf32>
    %c0_17 = arith.constant 0 : index
    %c0_18 = arith.constant 0 : index
    %23 = vector.load %arg8[%c0_17, %c0_18] : memref<8x128xf32, #tpu.memory_space<vmem>>, vector<8x128xf32>
    tpu.vector_store %arg8[%c0_17, %c0_18], %22 {strides = array<i32>} : memref<8x128xf32, #tpu.memory_space<vmem>>, vector<8x128xf32>,
    return
  }
  func.func @transform_0(%arg0: i32) -> (i32, i32) {
    %c0_i32 = arith.constant 0 : i32
    %c0_i32_0 = arith.constant 0 : i32
    return %arg0, %c0_i32 : i32, i32
  }
  func.func @transform_1(%arg0: i32) -> (i32, i32) {
    %c0_i32 = arith.constant 0 : i32
    %c0_i32_0 = arith.constant 0 : i32
    %c0_i32_1 = arith.constant 0 : i32
    return %c0_i32, %c0_i32_0 : i32, i32
  }
  func.func @transform_2(%arg0: i32) -> (i32, i32) {
    %c0_i32 = arith.constant 0 : i32
    %c0_i32_0 = arith.constant 0 : i32
    %c0_i32_1 = arith.constant 0 : i32
    return %c0_i32, %c0_i32_0 : i32, i32
  }
  func.func @transform_3(%arg0: i32) -> (i32, i32) {
    %c0_i32 = arith.constant 0 : i32
    %c0_i32_0 = arith.constant 0 : i32
    %c0_i32_1 = arith.constant 0 : i32
    return %c0_i32, %c0_i32_0 : i32, i32
  }
  func.func @transform_4(%arg0: i32) -> (i32, i32) {
    %c0_i32 = arith.constant 0 : i32
    %c0_i32_0 = arith.constant 0 : i32
    %c0_i32_1 = arith.constant 0 : i32
    return %c0_i32, %c0_i32_0 : i32, i32
  }
  func.func @transform_5(%arg0: i32) -> (i32, i32) {
    %c0_i32 = arith.constant 0 : i32
    %c0_i32_0 = arith.constant 0 : i32
    %c0_i32_1 = arith.constant 0 : i32
    return %c0_i32, %c0_i32_0 : i32, i32
  }
  func.func @transform_6(%arg0: i32) -> (i32, i32) {
    %c0_i32 = arith.constant 0 : i32
    %c0_i32_0 = arith.constant 0 : i32
    %c0_i32_1 = arith.constant 0 : i32
    return %c0_i32, %c0_i32_0 : i32, i32
  }
  func.func @transform_7(%arg0: i32) -> (i32, i32) {
    %c0_i32 = arith.constant 0 : i32
    %c0_i32_0 = arith.constant 0 : i32
    return %arg0, %c0_i32 : i32, i32
  }
}

</mosaic_0001>

<bundles_post_ra>
// kernel: dqn_forward.1
= control target key start
LH: loop header
LB: loop body
LE: loop exit
PB: predicated region body
PF: predicated region fallthrough
CT: control target
= control target key end

     0   :  { %12 = vsyncpa [#allocation3], 0  ;;  %s748_s0 = inlined_call_operand.hbm [shape: f32[8,16], index: 0, kind: input, shape index: {}]   ;;  %s749_s1 = inlined_call_operand.hbm [shape: bf16[16,256], index: 1, kind: input, shape index: {}]   ;;  %s750_s2 = inlined_call_operand.hbm [shape: f32[1,256], index: 2, kind: input, shape index: {}]   ;;  %s751_s3 = inlined_call_operand.hbm [shape: bf16[256,128], index: 3, kind: input, shape index: {}]   ;;  %s752_s4 = inlined_call_operand.vmem [shape: f32[1,128], index: 4, kind: input, shape index: {}]   ;;  %s753_s5 = inlined_call_operand.hbm [shape: bf16[128,128], index: 5, kind: input, shape index: {}]   ;;  %s754_s6 = inlined_call_operand.vmem [shape: f32[1,128], index: 6, kind: input, shape index: {}]   ;;  %s755_s7 = inlined_call_operand.vmem [shape: f32[8,128], index: 7, kind: output, shape index: {}]  }
   0x1   :  { %13 = vsyncpa [#allocation5], 0  ;;  %s30_s26 = sshll.u32 %s749_s1, 4  ;;  %s31_s26 = int_to_ptr.hbm [resolvable:$true] %s30_s26 }
   0x2   :  { %14 = vsyncpa [#allocation8], 0  ;;  %s673_s27 = smov [#allocation4]   ;;  %s54_s8 = sshll.u32 %s751_s3, 4  ;;  %s55_s8 = int_to_ptr.hbm [resolvable:$true] %s54_s8 }
   0x3   :  { %s32_s28 = sshll.u32 %s673_s27, 4  ;;  %s674_s9 = smov 128   ;;  %s33_s28 = int_to_ptr.vmem [resolvable:$true] %s32_s28 }
   0x4   :  { %s675_s10 = smov 8   ;;  %s676_s11 = smov [#allocation7]  }
   0x5   :  { %38 = dma.hbm_to_vmem [thread:$0]  %s31_s26, 256, %s33_s28, [#allocation5], %s674_s9, %s674_s9, %s675_s10  }
   0x6   :  { %s56_s12 = sshll.u32 %s676_s11, 4  ;;  %s677_s13 = smov 64   ;;  %s57_s12 = int_to_ptr.vmem [resolvable:$true] %s56_s12 }
   0x7   :  { %s678_s14 = smov 4   ;;  %s20_s16 = sshll.u32 %s748_s0, 4  ;;  %s21_s16 = int_to_ptr.hbm [resolvable:$true] %s20_s16 }
   0x8   :  { %62 = dma.hbm_to_vmem [thread:$0]  %s55_s8, 2048, %s57_s12, [#allocation8], %s677_s13, %s677_s13, %s678_s14  }
   0x9   :  { %s679_s17 = smov [#allocation2]   ;;  %s44_s20 = sshll.u32 %s750_s2, 4  ;;  %s45_s20 = int_to_ptr.hbm [resolvable:$true] %s44_s20 }
   0xa   :  { %s22_s18 = sshll.u32 %s679_s17, 4  ;;  %s680_s21 = smov [#allocation6]   ;;  %s23_s18 = int_to_ptr.vmem [resolvable:$true] %s22_s18 }
   0xb   :  { %25 = dma.hbm_to_vmem [thread:$0]  %s21_s16, 128, %s23_s18, [#allocation3]  }
   0xc   :  { %s46_s22 = sshll.u32 %s680_s21, 4  ;;  %s69_s25 = sshll.u32 %s753_s5, 4  ;;  %s47_s22 = int_to_ptr.vmem [resolvable:$true] %s46_s22  ;;  %s70_s25 = int_to_ptr.hbm [resolvable:$true] %s69_s25 }
   0xd   :  { %49 = dma.hbm_to_vmem [thread:$0]  %s45_s20, 32, %s47_s22, [#allocation5]  }
   0xe   :  { %s681_s0 = smov [#allocation9]  }
   0xf   :  { %s71_s26 = sshll.u32 %s681_s0, 4  ;;  %s72_s26 = int_to_ptr.vmem [resolvable:$true] %s71_s26 }
  0x10   :  { %77 = dma.hbm_to_vmem [thread:$0]  %s70_s25, 1024, %s72_s26, [#allocation8], %s677_s13, %s677_s13, %s678_s14  }
  0x11   :  { %667 = dma.done.wait [#allocation3], 128  }
  0x12   :  { %668 = vsyncadd [#allocation3], 4294967168 }
  0x13   :  { %669 = dma.done.wait [#allocation5], 288  }
  0x14   :  { %670 = vsyncadd [#allocation5], 4294967008 }
  0x15   :  { %671 = dma.done.wait [#allocation8], 3072  }
  0x16   :  { %672 = vsyncadd [#allocation8], 4294964224  ;;  %v406_v0 = vld [vmem:[#allocation4] sm:$0xf]  ;;  %v511_v1 = vld [vmem:[#allocation4 + $0x4] sm:$0xf0] }
  0x17   :  { %v154_v2 = vld [vmem:[#allocation2] sm:$0xff]  ;;  %v407_v3 = vor.u32 %v511_v1, %v406_v0  ;;  %v510_v4 = vld [vmem:[#allocation4 + $0x4] sm:$0xf]  ;;  %v408_v5 = vld [vmem:[#allocation4 + $0x8] sm:$0xf0]  ;;  %vm171_vm0 = vcmask 130048  }
  0x18   :  { %v519_v6 = vld [vmem:[#allocation7 + $0x38] sm:$0xff]  ;;  %v155_v7 = vpack.c.bf16 %v154_v2, %v154_v2  ;;  %v411_v8 = vor.u32 %v510_v4, %v408_v5  ;;  %v518_v9 = vld [vmem:[#allocation7 + $0x30] sm:$0xff]  ;;  %v517_v12 = vld [vmem:[#allocation7 + $0x28] sm:$0xff] }
  0x19   :  { %182 = vmatpush.bf16.msra.mxu1 %v407_v3  ;;  %304 = vmatpush.bf16.msra.mxu2 %v519_v6  ;;  %v527_v10 = vld [vmem:[#allocation7 + $0x78] sm:$0xff]  ;;  %v526_v11 = vld [vmem:[#allocation7 + $0x70] sm:$0xff]  ;;  %v516_v13 = vld [vmem:[#allocation7 + $0x20] sm:$0xff] }
  0x1a   :  { %317 = vmatpush.bf16.msra.mxu3 %v527_v10  ;;  %v515_v14 = vld [vmem:[#allocation7 + $0x18] sm:$0xff]  ;;  %v514_v15 = vld [vmem:[#allocation7 + $0x10] sm:$0xff]  ;;  %v513_v16 = vld [vmem:[#allocation7 + $0x8] sm:$0xff] }
  0x1b   :  { %v525_v17 = vld [vmem:[#allocation7 + $0x68] sm:$0xff]  ;;  %v512_v18 = vld [vmem:[#allocation7] sm:$0xff]  ;;  %v523_v20 = vld [vmem:[#allocation7 + $0x58] sm:$0xff] }
  0x1c   :  { %412 = vmatmul.msk.bf16.vlgmr.msra.gmra.mxu1 %vm171_vm0, %v155_v7  ;;  %v524_v19 = vld [vmem:[#allocation7 + $0x60] sm:$0xff]  ;;  %v522_v21 = vld [vmem:[#allocation7 + $0x50] sm:$0xff]  ;;  %v521_v22 = vld [vmem:[#allocation7 + $0x48] sm:$0xff] }
  0x1d   :  { %195 = vmatpush.bf16.msrb.mxu1 %v411_v8  ;;  %305 = vmatpush.bf16.msra.mxu2 %v518_v9  ;;  %v520_v23 = vld [vmem:[#allocation7 + $0x40] sm:$0xff]  ;;  %v535_v24 = vld [vmem:[#allocation9 + $0x38] sm:$0xff]  ;;  %v534_v26 = vld [vmem:[#allocation9 + $0x30] sm:$0xff] }
  0x1e   :  { %318 = vmatpush.bf16.msra.mxu3 %v526_v11  ;;  %v151_v25 = vld [vmem:[#allocation6] sm:$0x3]  ;;  %383 = vmatpush.bf16.msra.mxu0 %v535_v24  ;;  %v533_v39 = vld [vmem:[#allocation9 + $0x28] sm:$0xff]  ;;  %v532_v40 = vld [vmem:[#allocation9 + $0x20] sm:$0xff] }
  0x1f   :  { %v157_v27 = vperm.slane %v151_v25, 0  ;;  %v158_v33 = vperm.slane %v151_v25, 1  ;;  %v531_v41 = vld [vmem:[#allocation9 + $0x18] sm:$0xff]  ;;  %v530_v42 = vld [vmem:[#allocation9 + $0x10] sm:$0xff]  ;;  %v529_v43 = vld [vmem:[#allocation9 + $0x8] sm:$0xff] }
  0x20   :  { %v528_v44 = vld [vmem:[#allocation9] sm:$0xff] }
  0x21   :  { %306 = vmatpush.bf16.msra.mxu2 %v517_v12  ;;  %v545_v47 = vld [vmem:[%s752_s4] ss:$0 sm:$0xff] }
  0x22   :  { %319 = vmatpush.bf16.msra.mxu3 %v525_v17  ;;  %384 = vmatpush.bf16.msra.mxu0 %v534_v26  ;;  %v546_v54 = vld [vmem:[%s754_s6] ss:$0 sm:$0xff] }
  0x25   :  { %307 = vmatpush.bf16.msra.mxu2 %v516_v13 }
  0x26   :  { %320 = vmatpush.bf16.msra.mxu3 %v524_v19  ;;  %385 = vmatpush.bf16.msra.mxu0 %v533_v39 }
  0x29   :  { %308 = vmatpush.bf16.msra.mxu2 %v515_v14 }
  0x2a   :  { %321 = vmatpush.bf16.msra.mxu3 %v523_v20  ;;  %386 = vmatpush.bf16.msra.mxu0 %v532_v40 }
  0x2c   :  { %413 = vmatmul.msk.bf16.vlgmr.msrb.gmra.mxu1 %vm171_vm0, %v155_v7 }
  0x2d   :  { %309 = vmatpush.bf16.msra.mxu2 %v514_v15 }
  0x2e   :  { %322 = vmatpush.bf16.msra.mxu3 %v522_v21  ;;  %387 = vmatpush.bf16.msra.mxu0 %v531_v41 }
  0x31   :  { %310 = vmatpush.bf16.msra.mxu2 %v513_v16 }
  0x32   :  { %323 = vmatpush.bf16.msra.mxu3 %v521_v22  ;;  %388 = vmatpush.bf16.msra.mxu0 %v530_v42 }
  0x35   :  { %311 = vmatpush.bf16.msra.mxu2 %v512_v18 }
  0x36   :  { %324 = vmatpush.bf16.msra.mxu3 %v520_v23  ;;  %389 = vmatpush.bf16.msra.mxu0 %v529_v43 }
  0x3a   :  { %390 = vmatpush.bf16.msra.mxu0 %v528_v44 }
  0x99   :  { %v184_v28 = vpop.f32.mrf.mxu1 }
  0x9a   :  { %v185_v29 = vadd.f32 %v184_v28, %v157_v27 }
  0x9c   :  { %v201_v30 = vmax.f32 %v185_v29, 0.0 }
  0x9e   :  { %v203_v31 = vpack.c.bf16 %v201_v30, %v201_v30 }
  0xa0   :  { %312 = vmatmul.bf16.vlgmr.msra.gmra.mxu2 %v203_v31 }
  0xa1   :  { %v186_v32 = vpop.f32.mrf.mxu1 }
  0xa9   :  { %v197_v34 = vpop.f32.mrf.mxu1 }
  0xaa   :  { %v198_v35 = vadd.f32 %v197_v34, %v158_v33 }
  0xac   :  { %v202_v36 = vmax.f32 %v198_v35, 0.0 }
  0xae   :  { %v204_v37 = vpack.c.bf16 %v202_v36, %v202_v36 }
  0xb0   :  { %325 = vmatmul.bf16.vlgmr.msra.gmra.mxu3 %v204_v37 }
  0xb1   :  { %v199_v38 = vpop.f32.mrf.mxu1 }
 0x123   :  { %v313_v45 = vpop.f32.mrf.mxu2 }
 0x124   :  { %v314_v48 = vadd.f32 %v545_v47, %v313_v45 }
 0x12b   :  { %v315_v46 = vpop.f32.mrf.mxu2 }
 0x133   :  { %v326_v49 = vpop.f32.mrf.mxu3 }
 0x134   :  { %v327_v50 = vadd.f32 %v326_v49, %v314_v48 }
 0x136   :  { %v330_v51 = vmax.f32 %v327_v50, 0.0 }
 0x138   :  { %v331_v52 = vpack.c.bf16 %v330_v51, %v330_v51 }
 0x13a   :  { %391 = vmatmul.bf16.vlgmr.msra.gmra.mxu0 %v331_v52 }
 0x13b   :  { %v328_v53 = vpop.f32.mrf.mxu3 }
 0x1b7   :  { %v392_v55 = vpop.f32.mrf.mxu0 }
 0x1b8   :  { %v393_v56 = vadd.f32 %v546_v54, %v392_v55 }
 0x1ba   :  { %396 = vst [vmem:[%s755_s7] sm:$0xff] %v393_v56 }
 0x1bf   :  { %v394_v57 = vpop.f32.mrf.mxu0 }
 0x1c0   :  { %401 = vsyncpa [#allocation3], 1 }
 0x1c1   :  { %402 = vsyncpa [#allocation5], 1 }
 0x1c2   :  { %403 = vsyncpa [#allocation8], 1 }

</bundles_post_ra>
